<compile_context>
chip_gen: v5e
topology: v5e:2x2
jax: 0.10.0
libtpu: 0.0.40
codegen_flags: <defaults>
</compile_context>

<pallas_src>
import jax
import jax.numpy as jnp
from jax.experimental import pallas as pl
from jax.experimental.pallas import tpu as pltpu


_LANE = 128


def _round_up(x: int, m: int) -> int:
    return ((x + m - 1) // m) * m


def _tpu_vmem_bytes():
    """Physical VMEM per core, or None if it cannot be queried."""
    try:
        info = pltpu.get_tpu_info()
        return int(getattr(info, "vmem_capacity_bytes"))
    except Exception:
        return None


def _default_tb_max() -> int:
    """Default lane-tile cap, sized to the chip's VMEM."""
    vmem = _tpu_vmem_bytes()
    if vmem is None:
        return 32 * 1024                 # safe conservative default
    if vmem >= 100 * 1024 * 1024:        # v5e / v6e: 128 MiB VMEM
        return 128 * 1024
    if vmem >= 48 * 1024 * 1024:         # v7x: 64 MiB VMEM per TensorCore
        return 32 * 1024
    return 16 * 1024                     # older / smaller parts


def _vmem_limit_bytes():
    """Explicit scoped-VMEM cap with headroom; None -> keep compiler default."""
    vmem = _tpu_vmem_bytes()
    if vmem is None:
        return None
    return int(vmem * 3 // 4)            # v7x ~48 MiB, v5e/v6e ~96 MiB


def _pick_batch_tiling(B: int, tb_max: int):
    """Pick the lane tile (TB) and tile count for the batch axis.

    TB is a multiple of 128 and <= tb_max.  For non-tiny B the tile count is
    kept >= 2 and even so the "parallel" batch axis splits evenly across the
    two v7x TensorCores (no effect on single-TC v5e/v6e).
    """
    if tb_max <= 0 or tb_max % _LANE != 0:
        raise ValueError(f"tb_max must be a positive multiple of {_LANE}, got {tb_max}")
    b128 = _round_up(max(B, 1), _LANE)
    if b128 <= _LANE:
        return b128, 1                   # a single 128-lane tile of work
    n = max(2, pl.cdiv(b128, tb_max))
    if n % 2:
        n += 1
    tb = _round_up(pl.cdiv(b128, n), _LANE)
    n = pl.cdiv(b128, tb)
    if n > 1 and n % 2:
        n += 1
    return tb, n


def _mlp_kernel(x_ref, w1_ref, b1_ref, w2_ref, b2_ref, w3_ref, b3_ref, o_ref):
    # Batch rides the 128-wide lane axis: x is (4, TB); weights are torch
    # layout (out, in); biases are (out, 1) and broadcast along the lanes.
    # The three tiny-K matmuls go to the MXU; the kernel is memory bound so
    # their shape is irrelevant.
    x = x_ref[...]                                                          # (4, TB)
    h1 = jnp.dot(w1_ref[...], x, preferred_element_type=jnp.float32)       # (8, TB)
    h1 = jnp.maximum(h1 + b1_ref[...], 0.0)                                # ReLU
    h2 = jnp.dot(w2_ref[...], h1, preferred_element_type=jnp.float32)      # (8, TB)
    h2 = jnp.maximum(h2 + b2_ref[...], 0.0)                                # ReLU
    logits = jnp.dot(w3_ref[...], h2, preferred_element_type=jnp.float32)  # (3, TB)
    o_ref[...] = (logits + b3_ref[...]).astype(o_ref.dtype)
    # TODO(synk): Model_4 also constructs nn.Softmax(-1), but forward() returns
    # the pre-softmax linear output, so softmax is intentionally not applied.


def model_4_forward_fm(x_fm, params, *, tb_max=None):
    """Feature-major fast path: x_fm (4, B) float32 -> logits (3, B) float32.

    No host-side transposes: all HBM traffic is the kernel's own lane-dense
    streamed tiles (only a pad is added when B is not a multiple of the tile).
    """
    f_in, B = x_fm.shape
    assert f_in == 4, f"Model_4 expects 4 input features, got {f_in}"
    if tb_max is None:
        tb_max = _default_tb_max()
    w1, b1 = params["w1"], params["b1"]
    w2, b2 = params["w2"], params["b2"]
    w3, b3 = params["w3"], params["b3"]
    f_out = w3.shape[0]

    TB, n_tiles = _pick_batch_tiling(B, tb_max)
    B_pad = TB * n_tiles
    if B_pad != B:
        x_fm = jnp.pad(x_fm, ((0, 0), (0, B_pad - B)))

    # Resident blocks: constant index map -> stay in VMEM, no per-step re-DMA.
    resident = lambda a: pl.BlockSpec(a.shape, lambda i: (0, 0))

    out = pl.pallas_call(
        _mlp_kernel,
        out_shape=jax.ShapeDtypeStruct((f_out, B_pad), jnp.float32),
        grid=(n_tiles,),
        in_specs=[
            pl.BlockSpec((f_in, TB), lambda i: (0, i)),   # streamed, double-buffered
            resident(w1), resident(b1),
            resident(w2), resident(b2),
            resident(w3), resident(b3),
        ],
        out_specs=pl.BlockSpec((f_out, TB), lambda i: (0, i)),
        compiler_params=pltpu.CompilerParams(
            dimension_semantics=("parallel",),            # batch across TCs on v7x
            vmem_limit_bytes=_vmem_limit_bytes(),
        ),
    )(x_fm, w1, b1, w2, b2, w3, b3)

    return out if B_pad == B else out[:, :B]


def model_4_forward(x, params, *, tb_max=None):
    """PyTorch-layout wrapper: x (B, 4) -> (B, 3), matching Model_4.forward.

    NOTE: the two transposes below are separate XLA copies (~2-3x extra HBM
    traffic for this memory-bound model).  Prefer `model_4_forward_fm` with a
    feature-major calling convention when throughput matters.
    """
    B, f_in = x.shape
    assert f_in == 4, f"Model_4 expects 4 input features, got {f_in}"
    return model_4_forward_fm(x.T, params, tb_max=tb_max).T


def init_params(key):
    """Mimic torch.nn.Linear init: U(-1/sqrt(fan_in), 1/sqrt(fan_in)).

    Weights in torch layout (out_features, in_features); biases as
    (out_features, 1) so they broadcast over the lane/batch axis in-kernel.
    """
    dims = [(4, 8), (8, 8), (8, 3)]
    params = {}
    keys = jax.random.split(key, 2 * len(dims))
    for i, (fan_in, fan_out) in enumerate(dims):
        bound = 1.0 / (fan_in ** 0.5)
        params[f"w{i + 1}"] = jax.random.uniform(
            keys[2 * i], (fan_out, fan_in), minval=-bound, maxval=bound,
            dtype=jnp.float32)
        params[f"b{i + 1}"] = jax.random.uniform(
            keys[2 * i + 1], (fan_out, 1), minval=-bound, maxval=bound,
            dtype=jnp.float32)
    return params


def reference_forward(x, params):
    """Plain-JAX reference matching the PyTorch forward semantics (x: (B, 4))."""
    h = jnp.maximum(x @ params["w1"].T + params["b1"].T, 0.0)
    h = jnp.maximum(h @ params["w2"].T + params["b2"].T, 0.0)
    return h @ params["w3"].T + params["b3"].T


if __name__ == "__main__":
    key = jax.random.PRNGKey(0)
    pkey, k1, k2, k3 = jax.random.split(key, 4)
    params = init_params(pkey)

    # 1) Small batch through the PyTorch-layout wrapper (natural module usage).
    x_small = jax.random.normal(k1, (8, 4), dtype=jnp.float32)
    out_small = jax.block_until_ready(model_4_forward(x_small, params))
    assert out_small.shape == (8, 3)
    assert jnp.allclose(out_small, reference_forward(x_small, params),
                        atol=1e-5, rtol=1e-5), "mismatch vs reference (B=8)"

    # 2) Non-128-aligned batch (exercises padding + final slice).
    x_rag = jax.random.normal(k2, (1000, 4), dtype=jnp.float32)
    out_rag = jax.block_until_ready(model_4_forward(x_rag, params))
    assert out_rag.shape == (1000, 3)
    assert jnp.allclose(out_rag, reference_forward(x_rag, params),
                        atol=1e-5, rtol=1e-5), "mismatch vs reference (B=1000)"

    # 3) Feature-major fast path with a forced multi-tile (even) batch grid.
    x_fm = jax.random.normal(k3, (4, 4096), dtype=jnp.float32)
    out_fm = jax.block_until_ready(model_4_forward_fm(x_fm, params, tb_max=2048))
    assert out_fm.shape == (3, 4096)
    ref_fm = reference_forward(x_fm.T, params).T
    assert jnp.allclose(out_fm, ref_fm, atol=1e-5, rtol=1e-5), \
        "mismatch vs reference (feature-major, multi-tile)"

    print("KERNEL_OK")
</pallas_src>

<mosaic_0001>
module attributes {stable_mosaic.version = 11 : i64} {
  func.func @_mlp_kernel(%arg0: i32, %arg1: memref<4x128xf32, #tpu.memory_space<vmem>>, %arg2: memref<8x4xf32, #tpu.memory_space<vmem>>, %arg3: memref<8x1xf32, #tpu.memory_space<vmem>>, %arg4: memref<8x8xf32, #tpu.memory_space<vmem>>, %arg5: memref<8x1xf32, #tpu.memory_space<vmem>>, %arg6: memref<3x8xf32, #tpu.memory_space<vmem>>, %arg7: memref<3x1xf32, #tpu.memory_space<vmem>>, %arg8: memref<3x128xf32, #tpu.memory_space<vmem>>) attributes {dimension_semantics = [#tpu.dimension_semantics<parallel>], iteration_bounds = array<i64: 1>, scalar_prefetch = 0 : i64, scratch_operands = 0 : i64, tpu.core_type = #tpu.core_type<tc>, window_params = [{transform_indices = @transform_0, window_bounds = array<i64: 4, 128>}, {pipeline_mode = #tpu.pipeline_mode<synchronous>, transform_indices = @transform_1, window_bounds = array<i64: 8, 4>}, {pipeline_mode = #tpu.pipeline_mode<synchronous>, transform_indices = @transform_2, window_bounds = array<i64: 8, 1>}, {pipeline_mode = #tpu.pipeline_mode<synchronous>, transform_indices = @transform_3, window_bounds = array<i64: 8, 8>}, {pipeline_mode = #tpu.pipeline_mode<synchronous>, transform_indices = @transform_4, window_bounds = array<i64: 8, 1>}, {pipeline_mode = #tpu.pipeline_mode<synchronous>, transform_indices = @transform_5, window_bounds = array<i64: 3, 8>}, {pipeline_mode = #tpu.pipeline_mode<synchronous>, transform_indices = @transform_6, window_bounds = array<i64: 3, 1>}, {transform_indices = @transform_7, window_bounds = array<i64: 3, 128>}]} {
    %c0 = arith.constant 0 : index
    %c0_0 = arith.constant 0 : index
    %0 = vector.load %arg1[%c0, %c0_0] : memref<4x128xf32, #tpu.memory_space<vmem>>, vector<4x128xf32>
    %c0_1 = arith.constant 0 : index
    %c0_2 = arith.constant 0 : index
    %1 = vector.load %arg2[%c0_1, %c0_2] : memref<8x4xf32, #tpu.memory_space<vmem>>, vector<8x4xf32>
    %cst = arith.constant dense<0.000000e+00> : vector<8x128xf32>
    %2 = tpu.matmul %1, %0, %cst {dimension_numbers = #tpu.dot_dimension_numbers<[1], [0], [0], [1], [0, 0, 1, 1], [], []>} : vector<8x4xf32>, vector<4x128xf32>, vector<8x128xf32> -> vector<8x128xf32>
    %c0_3 = arith.constant 0 : index
    %c0_4 = arith.constant 0 : index
    %3 = vector.load %arg3[%c0_3, %c0_4] : memref<8x1xf32, #tpu.memory_space<vmem>>, vector<8x1xf32>
    %4 = vector.broadcast %3 : vector<8x1xf32> to vector<8x128xf32>
    %5 = arith.addf %2, %4 : vector<8x128xf32>
    %cst_5 = arith.constant 0.000000e+00 : f32
    %6 = vector.broadcast %cst_5 : f32 to vector<8x128xf32>
    %7 = arith.maximumf %5, %6 : vector<8x128xf32>
    %c0_6 = arith.constant 0 : index
    %c0_7 = arith.constant 0 : index
    %8 = vector.load %arg4[%c0_6, %c0_7] : memref<8x8xf32, #tpu.memory_space<vmem>>, vector<8x8xf32>
    %cst_8 = arith.constant dense<0.000000e+00> : vector<8x128xf32>
    %9 = tpu.matmul %8, %7, %cst_8 {dimension_numbers = #tpu.dot_dimension_numbers<[1], [0], [0], [1], [0, 0, 1, 1], [], []>} : vector<8x8xf32>, vector<8x128xf32>, vector<8x128xf32> -> vector<8x128xf32>
    %c0_9 = arith.constant 0 : index
    %c0_10 = arith.constant 0 : index
    %10 = vector.load %arg5[%c0_9, %c0_10] : memref<8x1xf32, #tpu.memory_space<vmem>>, vector<8x1xf32>
    %11 = vector.broadcast %10 : vector<8x1xf32> to vector<8x128xf32>
    %12 = arith.addf %9, %11 : vector<8x128xf32>
    %cst_11 = arith.constant 0.000000e+00 : f32
    %13 = vector.broadcast %cst_11 : f32 to vector<8x128xf32>
    %14 = arith.maximumf %12, %13 : vector<8x128xf32>
    %c0_12 = arith.constant 0 : index
    %c0_13 = arith.constant 0 : index
    %15 = vector.load %arg6[%c0_12, %c0_13] : memref<3x8xf32, #tpu.memory_space<vmem>>, vector<3x8xf32>
    %cst_14 = arith.constant dense<0.000000e+00> : vector<3x128xf32>
    %16 = tpu.matmul %15, %14, %cst_14 {dimension_numbers = #tpu.dot_dimension_numbers<[1], [0], [0], [1], [0, 0, 1, 1], [], []>} : vector<3x8xf32>, vector<8x128xf32>, vector<3x128xf32> -> vector<3x128xf32>
    %c0_15 = arith.constant 0 : index
    %c0_16 = arith.constant 0 : index
    %17 = vector.load %arg7[%c0_15, %c0_16] : memref<3x1xf32, #tpu.memory_space<vmem>>, vector<3x1xf32>
    %18 = vector.broadcast %17 : vector<3x1xf32> to vector<3x128xf32>
    %19 = arith.addf %16, %18 : vector<3x128xf32>
    %c0_17 = arith.constant 0 : index
    %c0_18 = arith.constant 0 : index
    %20 = vector.load %arg8[%c0_17, %c0_18] : memref<3x128xf32, #tpu.memory_space<vmem>>, vector<3x128xf32>
    tpu.vector_store %arg8[%c0_17, %c0_18], %19 {strides = array<i32>} : memref<3x128xf32, #tpu.memory_space<vmem>>, vector<3x128xf32>,
    return
  }
  func.func @transform_0(%arg0: i32) -> (i32, i32) {
    %c0_i32 = arith.constant 0 : i32
    %c0_i32_0 = arith.constant 0 : i32
    return %c0_i32, %arg0 : i32, i32
  }
  func.func @transform_1(%arg0: i32) -> (i32, i32) {
    %c0_i32 = arith.constant 0 : i32
    %c0_i32_0 = arith.constant 0 : i32
    %c0_i32_1 = arith.constant 0 : i32
    return %c0_i32, %c0_i32_0 : i32, i32
  }
  func.func @transform_2(%arg0: i32) -> (i32, i32) {
    %c0_i32 = arith.constant 0 : i32
    %c0_i32_0 = arith.constant 0 : i32
    %c0_i32_1 = arith.constant 0 : i32
    return %c0_i32, %c0_i32_0 : i32, i32
  }
  func.func @transform_3(%arg0: i32) -> (i32, i32) {
    %c0_i32 = arith.constant 0 : i32
    %c0_i32_0 = arith.constant 0 : i32
    %c0_i32_1 = arith.constant 0 : i32
    return %c0_i32, %c0_i32_0 : i32, i32
  }
  func.func @transform_4(%arg0: i32) -> (i32, i32) {
    %c0_i32 = arith.constant 0 : i32
    %c0_i32_0 = arith.constant 0 : i32
    %c0_i32_1 = arith.constant 0 : i32
    return %c0_i32, %c0_i32_0 : i32, i32
  }
  func.func @transform_5(%arg0: i32) -> (i32, i32) {
    %c0_i32 = arith.constant 0 : i32
    %c0_i32_0 = arith.constant 0 : i32
    %c0_i32_1 = arith.constant 0 : i32
    return %c0_i32, %c0_i32_0 : i32, i32
  }
  func.func @transform_6(%arg0: i32) -> (i32, i32) {
    %c0_i32 = arith.constant 0 : i32
    %c0_i32_0 = arith.constant 0 : i32
    %c0_i32_1 = arith.constant 0 : i32
    return %c0_i32, %c0_i32_0 : i32, i32
  }
  func.func @transform_7(%arg0: i32) -> (i32, i32) {
    %c0_i32 = arith.constant 0 : i32
    %c0_i32_0 = arith.constant 0 : i32
    return %c0_i32, %arg0 : i32, i32
  }
}

</mosaic_0001>

<bundles_post_ra>
// kernel: tpu_custom_call.1
= control target key start
LH: loop header
LB: loop body
LE: loop exit
PB: predicated region body
PF: predicated region fallthrough
CT: control target
= control target key end

     0   :  { %vm39_vm0 = vcmask 1043456   ;;  %vm35_vm1 = vcmask 31744   ;;  %v177_v2 = vmov 0   ;;  %s243_s0 = inlined_call_operand.vmem [shape: f32[4,128], index: 0, kind: input, shape index: {}]   ;;  %s244_s1 = inlined_call_operand.vmem [shape: f32[8,4], index: 1, kind: input, shape index: {}]   ;;  %s245_s2 = inlined_call_operand.vmem [shape: f32[8,1], index: 2, kind: input, shape index: {}]   ;;  %s246_s3 = inlined_call_operand.vmem [shape: f32[8,8], index: 3, kind: input, shape index: {}]   ;;  %s247_s4 = inlined_call_operand.vmem [shape: f32[8,1], index: 4, kind: input, shape index: {}]   ;;  %s248_s5 = inlined_call_operand.vmem [shape: f32[3,8], index: 5, kind: input, shape index: {}]   ;;  %s249_s6 = inlined_call_operand.vmem [shape: f32[3,1], index: 6, kind: input, shape index: {}]   ;;  %s250_s7 = inlined_call_operand.hbm [shape: f32[3,128], index: 7, kind: output, shape index: {}]  }
   0x1   :  { %v27_v0 = vld [vmem:[%s243_s0] sm:$0xf]  ;;  %149 = vset.pattern.permute.xlu0 %v177_v2 }
   0x2   :  { %v28_v1 = vld [vmem:[%s244_s1] sm:$0xff]  ;;  %143 = vmatpush.msk.msra.mxu0 %vm39_vm0, %v27_v0 }
   0x3   :  { %v29_v3 = vld [vmem:[%s245_s2] sm:$0xff] }
   0x4   :  { %12 = vsyncpa [#allocation3], 0  ;;  %144 = vmatmul.msk.f32.vlgmr.msra.gmra.mxu0 %vm35_vm1, %v28_v1  ;;  %32 = vperm.xlu0 %149, %v29_v3   ;;  %v65_v4 = vld [vmem:[%s247_s4] sm:$0xff]  ;;  %vm71_vm2 = vcmask 64512   ;;  %s134_s14 = sshll.u32 %s250_s7, 4  ;;  %s135_s14 = int_to_ptr.hbm [resolvable:$true] %s134_s14 }
   0x5   :  { %150 = vset.pattern.permute.xlu1 %v177_v2  ;;  %v64_v9 = vld [vmem:[%s246_s3] sm:$0xff]  ;;  %s178_s3 = smov [#allocation2]  }
   0x6   :  { %v97_v10 = vld [vmem:[%s249_s6] sm:$0x7]  ;;  %s132_s11 = sshll.u32 %s178_s3, 4  ;;  %s133_s11 = int_to_ptr.vmem [resolvable:$true] %s132_s11 }
   0x7   :  { %100 = vperm.xlu1 %150, %v97_v10   ;;  %v96_v15 = vld [vmem:[%s248_s5] sm:$0x7] }
   0xc   :  { %68 = vperm.xlu0 %149, %v65_v4  }
  0x76   :  { %v33_v5 = vpop.permute.xlu0 %32 }
  0x79   :  { %v101_v16 = vpop.permute.xlu1 %100 }
  0x7e   :  { %v69_v11 = vpop.permute.xlu0 %68 }
  0x81   :  { %v60_v6 = vpop.f32.mrf.mxu0 }
  0x82   :  { %v61_v7 = vadd.f32 %v60_v6, %v33_v5 }
  0x84   :  { %v63_v8 = vmax.f32 %v61_v7, 0.0 }
  0x86   :  { %90 = vmatpush.msra.mxu1 %v63_v8 }
  0x87   :  { %145 = vmatmul.msk.f32.vlgmr.msra.gmra.mxu1 %vm71_vm2, %v64_v9 }
 0x104   :  { %v92_v12 = vpop.f32.mrf.mxu1 }
 0x105   :  { %v93_v13 = vadd.f32 %v92_v12, %v69_v11 }
 0x107   :  { %v95_v14 = vmax.f32 %v93_v13, 0.0 }
 0x109   :  { %121 = vmatpush.msra.mxu2 %v95_v14 }
 0x10a   :  { %146 = vmatmul.msk.f32.vlgmr.msra.gmra.mxu2 %vm71_vm2, %v96_v15 }
 0x18d   :  { %v123_v17 = vpop.f32.mrf.mxu2 }
 0x18e   :  { %v124_v18 = vadd.f32 %v123_v17, %v101_v16 }
 0x190   :  { %126 = vst [vmem:[#allocation2] sm:$0x7] %v124_v18 }
 0x191   :  { %137 = dma.vmem_to_hbm [thread:$0]  %s133_s11, 64, %s135_s14, [#allocation3]  }
 0x192   :  { %175 = dma.done.wait [#allocation3], 64  }
 0x193   :  { %176 = vsyncadd [#allocation3], 4294967232 }
 0x194   :  { %142 = vsyncpa [#allocation3], 1 }

</bundles_post_ra>
